<compile_context>
chip_gen: v5e
topology: v5e:2x2
jax: 0.10.0
libtpu: 0.0.40
codegen_flags: <defaults>
</compile_context>

<pallas_src>
from itertools import combinations

import numpy as np
import jax
import jax.numpy as jnp
from jax.experimental import pallas as pl
from jax.experimental.pallas import tpu as pltpu

EPS = 1e-5  # nn.BatchNorm1d default eps


def batchnorm_train(x, gamma, beta, eps=EPS):
    """nn.BatchNorm1d in training mode (batch statistics, biased variance)."""
    mean = jnp.mean(x, axis=0, keepdims=True)
    var = jnp.mean((x - mean) ** 2, axis=0, keepdims=True)
    return (x - mean) / jnp.sqrt(var + eps) * gamma + beta


def _round_up(x, m):
    return ((x + m - 1) // m) * m


def _vmem_budget_bytes():
    """Per-TensorCore VMEM budget for tiling, conservative per generation."""
    phys = 64 << 20                      # assume v7x-class core if query fails
    try:
        info = pltpu.get_tpu_info()
        phys = int(getattr(info, "vmem_capacity_bytes", phys))
    except Exception:
        pass
    if phys <= (96 << 20):               # v7x-class: 64 MiB physical
        return 36 << 20
    return 80 << 20                      # v5e / v6e: 128 MiB physical


# --------------------- kernel A: tiled collapse + batchnorm ---------------- #
def _make_collapse_bn_kernel(precision):
    def kernel(r0_ref, g0t_ref, f_ref, mbig_ref, gamma_ref, beta_ref,
               sbn_ref, acc_ref):
        t = pl.program_id(0)

        @pl.when(t == 0)
        def _():
            acc_ref[...] = jnp.zeros_like(acc_ref)

        # (B, d_r) x (d_r, tp) -> (B, tp): canonical [M,K]x[K,N], lane-dense tile
        t0 = jax.lax.dot_general(r0_ref[...], g0t_ref[...],
                                 (((1,), (0,)), ((), ())),
                                 preferred_element_type=jnp.float32,
                                 precision=precision)
        tf = t0 * f_ref[...]                        # absorb known-entity factors
        acc_ref[...] += jax.lax.dot_general(tf, mbig_ref[...],
                                            (((1,), (0,)), ((), ())),
                                            preferred_element_type=jnp.float32,
                                            precision=precision)

        @pl.when(t == pl.num_programs(0) - 1)
        def _():
            s = acc_ref[...]
            mean = jnp.mean(s, axis=0, keepdims=True)
            var = jnp.mean((s - mean) ** 2, axis=0, keepdims=True)
            sbn_ref[...] = ((s - mean) * jax.lax.rsqrt(var + EPS)
                            * gamma_ref[...] + beta_ref[...]).astype(sbn_ref.dtype)
    return kernel


# ------------------------ kernel B: logits GEMM ---------------------------- #
def _make_logits_kernel(precision):
    def kernel(sbn_ref, ewt_ref, out_ref):
        # (B, d_e) x (d_e, tn) -> (B, tn): canonical contraction, lane-dense RHS
        out_ref[...] = jax.lax.dot_general(sbn_ref[...], ewt_ref[...],
                                           (((1,), (0,)), ((), ())),
                                           preferred_element_type=jnp.float32,
                                           precision=precision
                                           ).astype(out_ref.dtype)
    return kernel


# ------------------------------ tile pickers ------------------------------- #
def _pick_p_tile(p, b, d_r, d_e, budget):
    cap = 2048 if budget <= (40 << 20) else 4096
    # per-unit-tp bytes: 2 pipelined buffers x f32 x (core row + F col + Mbig row)
    # plus ~2 live (B, tp) f32 intermediates (t0, tf)
    denom = max(8 * (d_r + d_e + 2 * b), 1)
    tp = (budget // 2) // denom
    tp = max(128, min(cap, (tp // 128) * 128))
    return min(tp, _round_up(p, 128))


def _pick_entity_tile(ne, b, d_e, w_isz, out_isz, budget):
    cap = 2048 if budget <= (40 << 20) else 4096
    invariant = 2 * b * d_e * 4          # resident S_bn (worst case f32, dbl-buffered)
    usable = max(int(budget * 0.6) - invariant, 1 << 20)
    tn = usable // (2 * (d_e * w_isz + b * out_isz))
    tn = max(128, min(cap, (tn // 128) * 128))
    # guarantee >=2 grid steps so v7x's two TensorCores (and the DMA pipeline)
    # are actually used whenever Ne allows it
    if ne > 128:
        tn = min(tn, _round_up(pl.cdiv(ne, 2), 128))
    return tn


# ------------------------------- wrapper ---------------------------------- #
def getd_fc_forward(params, r_idx, e_idx_list, miss, *, k, ni_list, bond_ranks,
                    W=None, logits_weight_dtype=jnp.float32,
                    logits_dtype=jnp.float32):
    assert 1 <= miss < k, "missing slot must be an entity position"
    B = int(r_idx.shape[0])
    d_r = ni_list[0]
    E_w = params["E"]
    Ne, d_e = E_w.shape

    # ---- glue: embeddings + input batchnorms (input_dropout p=0 -> identity)
    R0 = batchnorm_train(params["R"][r_idx], params["bnr_g"],
                         params["bnr_b"]).astype(jnp.float32)

    # ---- glue: core 0 flattened over its (0,j) bonds, streamed transposed as
    #      (d_r, P) so kernel-A weight tiles are lane-dense ([K, N] MXU layout).
    G0 = params["cores"][0]                       # (r01, ..., r0(k-1), d_r)
    P = int(np.prod(G0.shape[:-1]))
    G0T = jnp.reshape(G0, (P, d_r)).T.astype(jnp.float32)        # (d_r, P)

    # ---- glue: per-batch combined bond factor F[b, p] from known entities.
    # TODO(synk): build F inside kernel A from the small per-slot factors a_m
    # (outer-product broadcast on the VPU) to remove this (B, P) HBM round trip.
    F = jnp.ones((B, 1), jnp.float32)
    idx_known = 0
    for j in range(1, k):
        r0j = bond_ranks[(0, j)]
        if j == miss:
            fac = jnp.ones((B, r0j), jnp.float32)
        else:
            Gj = params["cores"][j]               # ((0,j) bond first, ..., n_j)
            Gj_red = jnp.reshape(Gj, (Gj.shape[0], -1, Gj.shape[-1])).sum(axis=1)
            Ej = batchnorm_train(params["E"][e_idx_list[idx_known]],
                                 params["bne_g"], params["bne_b"])
            idx_known += 1
            fac = Ej @ Gj_red.T                   # (B, r0j)
        F = (F[:, :, None] * fac[:, None, :]).reshape(B, -1)
    F = F.astype(jnp.float32)

    # ---- glue: missing core reduced over its non-(0,miss) bonds -> (P, n_miss)
    Gm = params["cores"][miss]
    M = jnp.reshape(Gm, (Gm.shape[0], -1, Gm.shape[-1])).sum(axis=1)
    shape0 = [bond_ranks[(0, j)] for j in range(1, k)]
    bshape = [1] * (k - 1) + [M.shape[-1]]
    bshape[miss - 1] = M.shape[0]
    Mbig = jnp.broadcast_to(
        jnp.reshape(M, bshape), tuple(shape0) + (M.shape[-1],)
    ).reshape(P, M.shape[-1]).astype(jnp.float32)

    gamma = params["bnw_g"].reshape(1, d_e).astype(jnp.float32)
    beta = params["bnw_b"].reshape(1, d_e).astype(jnp.float32)

    wdt = jnp.dtype(logits_weight_dtype)
    odt = jnp.dtype(logits_dtype)
    budget = _vmem_budget_bytes()

    # ------------------ kernel A: tiled collapse + batchnorm ----------------
    tp = _pick_p_tile(P, B, d_r, d_e, budget)
    Ppad = pl.cdiv(P, tp) * tp
    if Ppad != P:   # zero padding contributes nothing to the accumulation
        G0T = jnp.pad(G0T, ((0, 0), (0, Ppad - P)))
        F = jnp.pad(F, ((0, 0), (0, Ppad - P)))
        Mbig = jnp.pad(Mbig, ((0, Ppad - P), (0, 0)))

    flops_a = 2 * B * Ppad * (d_r + d_e) + 2 * B * Ppad + 10 * B * d_e
    bytes_a = (4 * (B * d_r + Ppad * d_r + B * Ppad + Ppad * d_e + 2 * d_e)
               + wdt.itemsize * B * d_e)

    sbn = pl.pallas_call(
        _make_collapse_bn_kernel(jax.lax.Precision.HIGHEST),
        out_shape=jax.ShapeDtypeStruct((B, d_e), wdt),  # written in streaming dtype
        grid_spec=pltpu.PrefetchScalarGridSpec(
            num_scalar_prefetch=0,
            grid=(Ppad // tp,),
            in_specs=[
                pl.BlockSpec((B, d_r), lambda t: (0, 0)),     # R0_bn (invariant)
                pl.BlockSpec((d_r, tp), lambda t: (0, t)),    # core-0 tile (lane-dense)
                pl.BlockSpec((B, tp), lambda t: (0, t)),      # F tile
                pl.BlockSpec((tp, d_e), lambda t: (t, 0)),    # Mbig tile
                pl.BlockSpec((1, d_e), lambda t: (0, 0)),     # bnw gamma
                pl.BlockSpec((1, d_e), lambda t: (0, 0)),     # bnw beta
            ],
            out_specs=pl.BlockSpec((B, d_e), lambda t: (0, 0)),
            scratch_shapes=[pltpu.VMEM((B, d_e), jnp.float32)],
        ),
        compiler_params=pltpu.CompilerParams(
            dimension_semantics=("arbitrary",),
            vmem_limit_bytes=budget),
        cost_estimate=pl.CostEstimate(flops=flops_a, transcendentals=d_e,
                                      bytes_accessed=bytes_a),
    )(R0, G0T, F, Mbig, gamma, beta)

    # ------------------------ kernel B: logits GEMM -------------------------
    # NOTE(perf): for sub-bf16 weight streaming use int8 on v5e/v6e and fp8 on
    # v7x (no integer MXU path there); bf16 is the portable default.
    tn = _pick_entity_tile(Ne, B, d_e, wdt.itemsize, odt.itemsize, budget)
    Ne_pad = pl.cdiv(Ne, tn) * tn
    # transpose folded into the cast that already copies the table -> (d_e, Ne)
    E_in = E_w.T.astype(wdt)
    if Ne_pad != Ne:
        E_in = jnp.pad(E_in, ((0, 0), (0, Ne_pad - Ne)))

    prec_b = (jax.lax.Precision.HIGHEST if wdt == jnp.dtype(jnp.float32)
              else jax.lax.Precision.DEFAULT)
    flops_b = 2 * B * d_e * Ne_pad
    bytes_b = (d_e * Ne_pad + B * d_e) * wdt.itemsize + B * Ne_pad * odt.itemsize

    logits = pl.pallas_call(
        _make_logits_kernel(prec_b),
        out_shape=jax.ShapeDtypeStruct((B, Ne_pad), odt),
        grid_spec=pltpu.PrefetchScalarGridSpec(
            num_scalar_prefetch=0,
            grid=(Ne_pad // tn,),
            in_specs=[
                # grid-invariant S_bn (pipeline_mode=pl.Buffered(1) would save
                # one (B, d_e) VMEM buffer; kept default for portability)
                pl.BlockSpec((B, d_e), lambda j: (0, 0)),
                # lane-dense (d_e, tn) weight tile in native [K, N] MXU layout
                pl.BlockSpec((d_e, tn), lambda j: (0, j)),
            ],
            out_specs=pl.BlockSpec((B, tn), lambda j: (0, j)),
        ),
        compiler_params=pltpu.CompilerParams(
            dimension_semantics=("parallel",),   # >=2 steps -> megacore sharding
            vmem_limit_bytes=budget),
        cost_estimate=pl.CostEstimate(flops=flops_b, transcendentals=0,
                                      bytes_accessed=bytes_b),
    )(sbn, E_in)
    if Ne_pad != Ne:
        logits = logits[:, :Ne]

    # TODO(synk): F.softmax(logits) is computed in the original forward but
    # never returned; fusing a softmax/BCE epilogue into kernel B would remove
    # the (B, Ne) HBM writeback entirely.  CUDA memory profiling / logging has
    # no TPU equivalent.
    return logits, W


# ----------------------- pure-JAX reference (einsums) ---------------------- #
def reference_forward(params, r_idx, e_idx_list, miss, k, edges, bond_ranks):
    bond_letters = {e: chr(ord('a') + i) for i, e in enumerate(edges)}
    phys = [chr(ord('A') + m) for m in range(k)]
    R0 = batchnorm_train(params["R"][r_idx], params["bnr_g"], params["bnr_b"])
    p0 = phys[0]
    b0 = [bond_letters[e] for e in edges if 0 in e]
    T = jnp.einsum(f"z{p0},{''.join(b0) + p0}->z{''.join(b0)}",
                   R0, params["cores"][0])
    sub = 'z' + ''.join(b0)
    idx_known = 0
    for m in range(1, k):
        if m == miss:
            continue
        Gm = params["cores"][m]
        pm = phys[m]
        bm = [bond_letters[e] for e in edges if m in e]
        Em = batchnorm_train(params["E"][e_idx_list[idx_known]],
                             params["bne_g"], params["bne_b"])
        idx_known += 1
        T = jnp.einsum(f"{sub},{''.join(bm) + pm},z{pm}->{sub}", T, Gm, Em)
    Gm = params["cores"][miss]
    pm = phys[miss]
    bm = [bond_letters[e] for e in edges if miss in e]
    T = jnp.einsum(f"{sub},{''.join(bm) + pm}->{sub + pm}", T, Gm)
    S = T.sum(axis=tuple(range(1, T.ndim - 1)))
    out = batchnorm_train(S, params["bnw_g"], params["bnw_b"])
    logits = out @ params["E"].T
    return logits


if __name__ == "__main__":
    # high ambient precision so the pure-JAX einsum reference is tight; the
    # kernels set precision explicitly and do not rely on this.
    jax.config.update("jax_default_matmul_precision", "highest")

    # small, self-consistent GETD_FC configuration: relation + 2 entity slots
    k = 3
    d_e, d_r = 32, 32
    ni_list = [d_r, d_e, d_e]
    rank_list = [8, 8, 8]                  # one rank per edge (0,1),(0,2),(1,2)
    Ne, Nr, B = 256, 16, 8
    miss = 2                               # predict the entity in slot 2

    edges = list(combinations(range(k), 2))
    bond_ranks = {e: rank_list[i] for i, e in enumerate(edges)}

    key = jax.random.PRNGKey(0)
    keys = jax.random.split(key, 8 + k)

    params = {
        "E": 0.001 * jax.random.normal(keys[0], (Ne, d_e), jnp.float32),
        "R": 0.001 * jax.random.normal(keys[1], (Nr, d_r), jnp.float32),
        "bnr_g": jnp.ones((d_r,), jnp.float32),
        "bnr_b": jnp.zeros((d_r,), jnp.float32),
        "bne_g": jnp.ones((d_e,), jnp.float32),
        "bne_b": jnp.zeros((d_e,), jnp.float32),
        "bnw_g": jnp.ones((d_e,), jnp.float32),
        "bnw_b": jnp.zeros((d_e,), jnp.float32),
    }
    cores = []
    for i in range(k):
        shape = []
        for j in range(k):
            if i == j:
                continue
            e = (i, j) if i < j else (j, i)
            shape.append(bond_ranks[e])
        shape.append(ni_list[i])
        cores.append(jax.random.uniform(keys[2 + i], tuple(shape),
                                        jnp.float32, -0.1, 0.1))
    params["cores"] = cores

    r_idx = jax.random.randint(keys[6], (B,), 0, Nr)
    e_idx_list = [jax.random.randint(keys[7], (B,), 0, Ne)]  # one known entity

    ref = reference_forward(params, r_idx, e_idx_list, miss, k, edges, bond_ranks)
    ref = jax.block_until_ready(ref)

    # full-precision path (exact w.r.t. the reference)
    logits, _ = getd_fc_forward(params, r_idx, e_idx_list, miss,
                                k=k, ni_list=ni_list, bond_ranks=bond_ranks)
    logits = jax.block_until_ready(logits)

    assert logits.shape == (B, Ne)
    assert np.allclose(np.asarray(logits), np.asarray(ref),
                       rtol=1e-3, atol=1e-5), "Pallas kernel mismatch vs reference"

    # bf16-streamed weight table + bf16 S_bn + bf16 logits output
    # (HBM-bandwidth savers); f32 MXU accumulation, loose tolerance check.
    logits_bf16, _ = getd_fc_forward(params, r_idx, e_idx_list, miss,
                                     k=k, ni_list=ni_list, bond_ranks=bond_ranks,
                                     logits_weight_dtype=jnp.bfloat16,
                                     logits_dtype=jnp.bfloat16)
    logits_bf16 = jax.block_until_ready(logits_bf16)
    lb = np.asarray(jnp.asarray(logits_bf16, jnp.float32))
    assert lb.shape == (B, Ne)
    assert np.all(np.isfinite(lb))
    assert np.allclose(lb, np.asarray(ref), rtol=5e-2, atol=2e-4), \
        "bf16-streamed logits too far off"

    print("KERNEL_OK")
</pallas_src>

<mosaic_0001>
module attributes {stable_mosaic.version = 11 : i64} {
  func.func @kernel(%arg0: i32, %arg1: memref<8x32xf32, #tpu.memory_space<vmem>>, %arg2: memref<32x128xf32, #tpu.memory_space<vmem>>, %arg3: memref<8x128xf32, #tpu.memory_space<vmem>>, %arg4: memref<128x32xf32, #tpu.memory_space<vmem>>, %arg5: memref<1x32xf32, #tpu.memory_space<vmem>>, %arg6: memref<1x32xf32, #tpu.memory_space<vmem>>, %arg7: memref<8x32xf32, #tpu.memory_space<vmem>>, %arg8: memref<8x32xf32, #tpu.memory_space<vmem>>) attributes {dimension_semantics = [#tpu.dimension_semantics<arbitrary>], iteration_bounds = array<i64: 1>, scalar_prefetch = 0 : i64, scratch_operands = 1 : i64, tpu.core_type = #tpu.core_type<tc>, window_params = [{pipeline_mode = #tpu.pipeline_mode<synchronous>, transform_indices = @transform_0, window_bounds = array<i64: 8, 32>}, {transform_indices = @transform_1, window_bounds = array<i64: 32, 128>}, {transform_indices = @transform_2, window_bounds = array<i64: 8, 128>}, {transform_indices = @transform_3, window_bounds = array<i64: 128, 32>}, {pipeline_mode = #tpu.pipeline_mode<synchronous>, transform_indices = @transform_4, window_bounds = array<i64: 1, 32>}, {pipeline_mode = #tpu.pipeline_mode<synchronous>, transform_indices = @transform_5, window_bounds = array<i64: 1, 32>}, {pipeline_mode = #tpu.pipeline_mode<synchronous>, transform_indices = @transform_6, window_bounds = array<i64: 8, 32>}]} {
    %c0_i32 = arith.constant 0 : i32
    %0 = arith.cmpi eq, %arg0, %c0_i32 : i32
    %1 = arith.extui %0 : i1 to i32
    %c0_i32_0 = arith.constant 0 : i32
    %2 = arith.cmpi ne, %1, %c0_i32_0 : i32
    scf.if %2 {
      %cst_15 = arith.constant 0.000000e+00 : f32
      %16 = vector.broadcast %cst_15 : f32 to vector<8x32xf32>
      %c0_16 = arith.constant 0 : index
      %c0_17 = arith.constant 0 : index
      %17 = vector.load %arg8[%c0_16, %c0_17] : memref<8x32xf32, #tpu.memory_space<vmem>>, vector<8x32xf32>
      tpu.vector_store %arg8[%c0_16, %c0_17], %16 {strides = array<i32>} : memref<8x32xf32, #tpu.memory_space<vmem>>, vector<8x32xf32>,
    } else {
    }
    %c0 = arith.constant 0 : index
    %c0_1 = arith.constant 0 : index
    %3 = vector.load %arg1[%c0, %c0_1] : memref<8x32xf32, #tpu.memory_space<vmem>>, vector<8x32xf32>
    %c0_2 = arith.constant 0 : index
    %c0_3 = arith.constant 0 : index
    %4 = vector.load %arg2[%c0_2, %c0_3] : memref<32x128xf32, #tpu.memory_space<vmem>>, vector<32x128xf32>
    %cst = arith.constant dense<0.000000e+00> : vector<8x128xf32>
    %5 = tpu.matmul %3, %4, %cst {dimension_numbers = #tpu.dot_dimension_numbers<[1], [0], [0], [1], [0, 0, 1, 1], [], []>, precision = #tpu.contract_precision<fp32>} : vector<8x32xf32>, vector<32x128xf32>, vector<8x128xf32> -> vector<8x128xf32>
    %c0_4 = arith.constant 0 : index
    %c0_5 = arith.constant 0 : index
    %6 = vector.load %arg3[%c0_4, %c0_5] : memref<8x128xf32, #tpu.memory_space<vmem>>, vector<8x128xf32>
    %7 = arith.mulf %5, %6 : vector<8x128xf32>
    %c0_6 = arith.constant 0 : index
    %c0_7 = arith.constant 0 : index
    %8 = vector.load %arg8[%c0_6, %c0_7] : memref<8x32xf32, #tpu.memory_space<vmem>>, vector<8x32xf32>
    %c0_8 = arith.constant 0 : index
    %c0_9 = arith.constant 0 : index
    %9 = vector.load %arg4[%c0_8, %c0_9] : memref<128x32xf32, #tpu.memory_space<vmem>>, vector<128x32xf32>
    %cst_10 = arith.constant dense<0.000000e+00> : vector<8x32xf32>
    %10 = tpu.matmul %7, %9, %cst_10 {dimension_numbers = #tpu.dot_dimension_numbers<[1], [0], [0], [1], [0, 0, 1, 1], [], []>, precision = #tpu.contract_precision<fp32>} : vector<8x128xf32>, vector<128x32xf32>, vector<8x32xf32> -> vector<8x32xf32>
    %11 = arith.addf %8, %10 : vector<8x32xf32>
    %c0_11 = arith.constant 0 : index
    %c0_12 = arith.constant 0 : index
    %12 = vector.load %arg8[%c0_11, %c0_12] : memref<8x32xf32, #tpu.memory_space<vmem>>, vector<8x32xf32>
    tpu.vector_store %arg8[%c0_11, %c0_12], %11 {strides = array<i32>} : memref<8x32xf32, #tpu.memory_space<vmem>>, vector<8x32xf32>,
    %c0_i32_13 = arith.constant 0 : i32
    %13 = arith.cmpi eq, %arg0, %c0_i32_13 : i32
    %14 = arith.extui %13 : i1 to i32
    %c0_i32_14 = arith.constant 0 : i32
    %15 = arith.cmpi ne, %14, %c0_i32_14 : i32
    scf.if %15 {
      %c0_15 = arith.constant 0 : index
      %c0_16 = arith.constant 0 : index
      %16 = vector.load %arg8[%c0_15, %c0_16] : memref<8x32xf32, #tpu.memory_space<vmem>>, vector<8x32xf32>
      %cst_17 = arith.constant dense<0.000000e+00> : vector<32xf32>
      %17 = vector.multi_reduction <add>, %16, %cst_17 [0] : vector<8x32xf32> to vector<32xf32>
      %18 = vector.shape_cast %17 : vector<32xf32> to vector<1x32xf32>
      %cst_18 = arith.constant 8.000000e+00 : f32
      %19 = vector.broadcast %cst_18 : f32 to vector<1x32xf32>
      %20 = arith.divf %18, %19 : vector<1x32xf32>
      %21 = vector.broadcast %20 : vector<1x32xf32> to vector<8x32xf32>
      %22 = arith.subf %16, %21 : vector<8x32xf32>
      %23 = arith.mulf %22, %22 : vector<8x32xf32>
      %cst_19 = arith.constant dense<0.000000e+00> : vector<32xf32>
      %24 = vector.multi_reduction <add>, %23, %cst_19 [0] : vector<8x32xf32> to vector<32xf32>
      %25 = vector.shape_cast %24 : vector<32xf32> to vector<1x32xf32>
      %cst_20 = arith.constant 8.000000e+00 : f32
      %26 = vector.broadcast %cst_20 : f32 to vector<1x32xf32>
      %27 = arith.divf %25, %26 : vector<1x32xf32>
      %28 = vector.broadcast %20 : vector<1x32xf32> to vector<8x32xf32>
      %29 = arith.subf %16, %28 : vector<8x32xf32>
      %cst_21 = arith.constant 9.99999974E-6 : f32
      %30 = vector.broadcast %cst_21 : f32 to vector<1x32xf32>
      %31 = arith.addf %27, %30 : vector<1x32xf32>
      %32 = math.rsqrt %31 : vector<1x32xf32>
      %33 = vector.broadcast %32 : vector<1x32xf32> to vector<8x32xf32>
      %34 = arith.mulf %29, %33 : vector<8x32xf32>
      %c0_22 = arith.constant 0 : index
      %c0_23 = arith.constant 0 : index
      %35 = vector.load %arg5[%c0_22, %c0_23] : memref<1x32xf32, #tpu.memory_space<vmem>>, vector<1x32xf32>
      %36 = vector.broadcast %35 : vector<1x32xf32> to vector<8x32xf32>
      %37 = arith.mulf %34, %36 : vector<8x32xf32>
      %c0_24 = arith.constant 0 : index
      %c0_25 = arith.constant 0 : index
      %38 = vector.load %arg6[%c0_24, %c0_25] : memref<1x32xf32, #tpu.memory_space<vmem>>, vector<1x32xf32>
      %39 = vector.broadcast %38 : vector<1x32xf32> to vector<8x32xf32>
      %40 = arith.addf %37, %39 : vector<8x32xf32>
      %c0_26 = arith.constant 0 : index
      %c0_27 = arith.constant 0 : index
      %41 = vector.load %arg7[%c0_26, %c0_27] : memref<8x32xf32, #tpu.memory_space<vmem>>, vector<8x32xf32>
      tpu.vector_store %arg7[%c0_26, %c0_27], %40 {strides = array<i32>} : memref<8x32xf32, #tpu.memory_space<vmem>>, vector<8x32xf32>,
    } else {
    }
    return
  }
  func.func @transform_0(%arg0: i32) -> (i32, i32) {
    %c0_i32 = arith.constant 0 : i32
    %c0_i32_0 = arith.constant 0 : i32
    %c0_i32_1 = arith.constant 0 : i32
    return %c0_i32, %c0_i32_0 : i32, i32
  }
  func.func @transform_1(%arg0: i32) -> (i32, i32) {
    %c0_i32 = arith.constant 0 : i32
    %c0_i32_0 = arith.constant 0 : i32
    return %c0_i32, %arg0 : i32, i32
  }
  func.func @transform_2(%arg0: i32) -> (i32, i32) {
    %c0_i32 = arith.constant 0 : i32
    %c0_i32_0 = arith.constant 0 : i32
    return %c0_i32, %arg0 : i32, i32
  }
  func.func @transform_3(%arg0: i32) -> (i32, i32) {
    %c0_i32 = arith.constant 0 : i32
    %c0_i32_0 = arith.constant 0 : i32
    return %arg0, %c0_i32 : i32, i32
  }
  func.func @transform_4(%arg0: i32) -> (i32, i32) {
    %c0_i32 = arith.constant 0 : i32
    %c0_i32_0 = arith.constant 0 : i32
    %c0_i32_1 = arith.constant 0 : i32
    return %c0_i32, %c0_i32_0 : i32, i32
  }
  func.func @transform_5(%arg0: i32) -> (i32, i32) {
    %c0_i32 = arith.constant 0 : i32
    %c0_i32_0 = arith.constant 0 : i32
    %c0_i32_1 = arith.constant 0 : i32
    return %c0_i32, %c0_i32_0 : i32, i32
  }
  func.func @transform_6(%arg0: i32) -> (i32, i32) {
    %c0_i32 = arith.constant 0 : i32
    %c0_i32_0 = arith.constant 0 : i32
    %c0_i32_1 = arith.constant 0 : i32
    return %c0_i32, %c0_i32_0 : i32, i32
  }
}

</mosaic_0001>

<bundles_post_ra>
// kernel: tpu_custom_call.1
= control target key start
LH: loop header
LB: loop body
LE: loop exit
PB: predicated region body
PF: predicated region fallthrough
CT: control target
= control target key end

     0   :  { %vm28_vm0 = vcmask 261120   ;;  %s1078_s0 = inlined_call_operand.vmem [shape: f32[8,32], index: 0, kind: input, shape index: {}]   ;;  %s1079_s1 = inlined_call_operand.vmem [shape: f32[32,128], index: 1, kind: input, shape index: {}]   ;;  %s1080_s2 = inlined_call_operand.vmem [shape: f32[8,128], index: 2, kind: input, shape index: {}]   ;;  %s1081_s3 = inlined_call_operand.vmem [shape: f32[128,32], index: 3, kind: input, shape index: {}]   ;;  %s1082_s4 = inlined_call_operand.vmem [shape: f32[1,32], index: 4, kind: input, shape index: {}]   ;;  %s1083_s5 = inlined_call_operand.vmem [shape: f32[1,32], index: 5, kind: input, shape index: {}]   ;;  %s1084_s6 = inlined_call_operand.hbm [shape: f32[8,32], index: 6, kind: output, shape index: {}]  }
   0x1   :  { %v34_v0 = vld [vmem:[%s1079_s1 + $0x18] sm:$0xff]  ;;  %v33_v1 = vld [vmem:[%s1079_s1 + $0x10] sm:$0xff]  ;;  %v32_v2 = vld [vmem:[%s1079_s1 + $0x8] sm:$0xff] }
   0x2   :  { %v736_v3 = vand.u32 4294901760, %v34_v0  ;;  %v738_v4 = vand.u32 4294901760, %v33_v1  ;;  %v740_v5 = vand.u32 4294901760, %v32_v2  ;;  %v31_v6 = vld [vmem:[%s1079_s1] sm:$0xff]  ;;  %v242_v10 = vld [vmem:[%s1081_s3 + $0x78] sm:$0xff]  ;;  %v241_v11 = vld [vmem:[%s1081_s3 + $0x70] sm:$0xff] }
   0x3   :  { %v30_v7 = vld [vmem:[%s1078_s0] sm:$0xff]  ;;  %v748_v8 = vand.u32 4294901760, %v31_v6  ;;  %v240_v12 = vld [vmem:[%s1081_s3 + $0x68] sm:$0xff]  ;;  %v775_v18 = vand.u32 4294901760, %v242_v10  ;;  %v777_v19 = vand.u32 4294901760, %v241_v11 }
   0x4   :  { %v37_v9 = vsel %vm28_vm0, %v30_v7, 0  ;;  %52 = vmatpush.msra.mxu0 %v736_v3  ;;  %v762_v13 = vsub.f32 %v34_v0, %v736_v3  ;;  %v767_v15 = vsub.f32 %v33_v1, %v738_v4  ;;  %v770_v16 = vsub.f32 %v32_v2, %v740_v5 }
   0x5   :  { %v764_v14 = vand.u32 4294901760, %v37_v9  ;;  %v773_v17 = vsub.f32 %v31_v6, %v748_v8  ;;  %v779_v20 = vand.u32 4294901760, %v240_v12  ;;  %v790_v26 = vsub.f32 %v242_v10, %v775_v18  ;;  %244 = vmatpush.msra.mxu2 %v775_v18 }
   0x6   :  { %54 = vmatpush.msra.mxu0 %v738_v4  ;;  %v82_v21 = vand.u32 4294901760, %v762_v13  ;;  %v88_v23 = vand.u32 4294901760, %v767_v15  ;;  %v94_v24 = vand.u32 4294901760, %v770_v16  ;;  %v793_v27 = vsub.f32 %v241_v11, %v777_v19 }
   0x7   :  { %v784_v22 = vsub.f32 %v37_v9, %v764_v14  ;;  %v100_v25 = vand.u32 4294901760, %v773_v17  ;;  %v796_v28 = vsub.f32 %v240_v12, %v779_v20 }
   0x8   :  { %11 = vsyncpa [#allocation4], 0  ;;  %56 = vmatpush.msra.mxu0 %v740_v5  ;;  %v83_v29 = vsub.f32 %v762_v13, %v82_v21  ;;  %v89_v31 = vsub.f32 %v767_v15, %v88_v23  ;;  %v95_v32 = vsub.f32 %v770_v16, %v94_v24  ;;  %v286_v34 = vand.u32 4294901760, %v790_v26  ;;  %v239_v37 = vld [vmem:[%s1081_s3 + $0x60] sm:$0xff]  ;;  %v238_v38 = vld [vmem:[%s1081_s3 + $0x58] sm:$0xff]  ;;  %246 = vmatpush.msra.mxu2 %v777_v19  ;;  %s691_s15 = smov [#allocation3]  }
   0x9   :  { %v61_v30 = vand.u32 4294901760, %v784_v22  ;;  %v101_v33 = vsub.f32 %v773_v17, %v100_v25  ;;  %v292_v35 = vand.u32 4294901760, %v793_v27  ;;  %v298_v36 = vand.u32 4294901760, %v796_v28  ;;  %v237_v39 = vld [vmem:[%s1081_s3 + $0x50] sm:$0xff]  ;;  %v236_v43 = vld [vmem:[%s1081_s3 + $0x48] sm:$0xff]  ;;  %v235_v48 = vld [vmem:[%s1081_s3 + $0x40] sm:$0xff] }
   0xa   :  { %58 = vmatpush.msra.mxu0 %v748_v8  ;;  %v84_v40 = vand.u32 4294901760, %v83_v29  ;;  %v90_v42 = vand.u32 4294901760, %v89_v31  ;;  %v96_v44 = vand.u32 4294901760, %v95_v32  ;;  %v287_v45 = vsub.f32 %v790_v26, %v286_v34  ;;  %248 = vmatpush.msra.mxu2 %v779_v20  ;;  %v234_v53 = vld [vmem:[%s1081_s3 + $0x38] sm:$0xff]  ;;  %v233_v54 = vld [vmem:[%s1081_s3 + $0x30] sm:$0xff]  ;;  %v232_v63 = vld [vmem:[%s1081_s3 + $0x28] sm:$0xff] }
   0xb   :  { %v62_v41 = vsub.f32 %v784_v22, %v61_v30  ;;  %v293_v46 = vsub.f32 %v793_v27, %v292_v35  ;;  %v299_v47 = vsub.f32 %v796_v28, %v298_v36  ;;  %v847_v50 = vand.u32 4294901760, %v239_v37  ;;  %s643_s16 = sshll.u32 %s691_s15, 4  ;;  %s645_s19 = sshll.u32 %s1084_s6, 4  ;;  %s644_s16 = int_to_ptr.vmem [resolvable:$true] %s643_s16  ;;  %s646_s19 = int_to_ptr.hbm [resolvable:$true] %s645_s19 }
   0xc   :  { %123 = vmatpush.msrb.mxu0 %v762_v13  ;;  %85 = vmatpush.msra.mxu1 %v84_v40  ;;  %v849_v51 = vand.u32 4294901760, %v238_v38  ;;  %v851_v52 = vand.u32 4294901760, %v237_v39  ;;  %v102_v55 = vand.u32 4294901760, %v101_v33  ;;  %v288_v56 = vand.u32 4294901760, %v287_v45 }
   0xd   :  { %v63_v49 = vand.u32 4294901760, %v62_v41  ;;  %v294_v57 = vand.u32 4294901760, %v293_v46  ;;  %v860_v58 = vand.u32 4294901760, %v236_v43  ;;  %v863_v59 = vsub.f32 %v239_v37, %v847_v50  ;;  %250 = vmatpush.msra.mxu2 %v847_v50 }
   0xe   :  { %126 = vmatpush.msrb.mxu0 %v767_v15  ;;  %91 = vmatpush.msra.mxu1 %v90_v42  ;;  %v866_v60 = vsub.f32 %v238_v38, %v849_v51  ;;  %v869_v61 = vsub.f32 %v237_v39, %v851_v52  ;;  %v871_v62 = vand.u32 4294901760, %v235_v48  ;;  %v300_v0 = vand.u32 4294901760, %v299_v47  ;;  %v230_v39 = vld [vmem:[%s1081_s3 + $0x18] sm:$0xff] }
   0xf   :  { %64 = vmatmul.f32.vlgmr.msra.gmra.mxu0 %v63_v49  ;;  %289 = vmatpush.msra.mxu3 %v288_v56  ;;  %v878_v1 = vsub.f32 %v236_v43, %v860_v58  ;;  %v880_v2 = vand.u32 4294901760, %v234_v53  ;;  %v882_v6 = vand.u32 4294901760, %v233_v54  ;;  %v304_v7 = vand.u32 4294901760, %v863_v59 }
  0x10   :  { %129 = vmatpush.msrb.mxu0 %v770_v16  ;;  %97 = vmatpush.msra.mxu1 %v96_v44  ;;  %v310_v9 = vand.u32 4294901760, %v866_v60  ;;  %v316_v10 = vand.u32 4294901760, %v869_v61  ;;  %v889_v11 = vsub.f32 %v235_v48, %v871_v62  ;;  %v896_v31 = vand.u32 4294901760, %v232_v63 }
  0x11   :  { %295 = vmatpush.msra.mxu3 %v294_v57  ;;  %v322_v12 = vand.u32 4294901760, %v878_v1  ;;  %v894_v29 = vsub.f32 %v234_v53, %v880_v2  ;;  %v305_v32 = vsub.f32 %v863_v59, %v304_v7  ;;  %v912_v13 = vsub.f32 %v233_v54, %v882_v6  ;;  %252 = vmatpush.msra.mxu2 %v849_v51 }
  0x12   :  { %132 = vmatpush.msrb.mxu0 %v773_v17  ;;  %103 = vmatpush.msra.mxu1 %v102_v55  ;;  %v311_v33 = vsub.f32 %v866_v60, %v310_v9  ;;  %v317_v37 = vsub.f32 %v869_v61, %v316_v10  ;;  %v328_v38 = vand.u32 4294901760, %v889_v11  ;;  %v929_v44 = vsub.f32 %v232_v63, %v896_v31 }
  0x13   :  { %105 = vmatmul.f32.vlgmr.msra.gmra.mxu1 %v764_v14  ;;  %301 = vmatpush.msra.mxu3 %v300_v0  ;;  %v306_v40 = vand.u32 4294901760, %v305_v32  ;;  %v323_v42 = vsub.f32 %v878_v1, %v322_v12  ;;  %v334_v43 = vand.u32 4294901760, %v894_v29  ;;  %v935_v15 = vand.u32 4294901760, %v230_v39  ;;  %v228_v0 = vld [vmem:[%s1081_s3 + $0x8] sm:$0xff] }
  0x14   :  { %181 = vmatpush.msra.mxu0 %v82_v21  ;;  %v231_v21 = vld [vmem:[%s1081_s3 + $0x20] sm:$0xff]  ;;  %152 = vmatpush.msrb.mxu1 %v736_v3  ;;  %v312_v41 = vand.u32 4294901760, %v311_v33  ;;  %v329_v46 = vsub.f32 %v889_v11, %v328_v38  ;;  %v340_v47 = vand.u32 4294901760, %v912_v13  ;;  %v346_v49 = vand.u32 4294901760, %v929_v44 }
  0x15   :  { %v933_v45 = vand.u32 4294901760, %v231_v21  ;;  %307 = vmatpush.msra.mxu3 %v306_v40  ;;  %254 = vmatpush.msra.mxu2 %v851_v52  ;;  %v324_v16 = vand.u32 4294901760, %v323_v42  ;;  %v955_v53 = vsub.f32 %v230_v39, %v935_v15  ;;  %v271_v33 = vand.u32 4294901760, %v228_v0 }
  0x16   :  { %185 = vmatpush.msra.mxu0 %v88_v23  ;;  %154 = vmatpush.msrb.mxu1 %v738_v4  ;;  %v318_v23 = vand.u32 4294901760, %v317_v37  ;;  %v330_v17 = vand.u32 4294901760, %v329_v46  ;;  %v347_v56 = vsub.f32 %v929_v44, %v346_v49  ;;  %v227_v37 = vld [vmem:[%s1081_s3] sm:$0xff] }
  0x17   :  { %135 = vmatmul.f32.vlgmr.msrb.gmra.mxu0 %v784_v22  ;;  %v946_v48 = vsub.f32 %v231_v21, %v933_v45  ;;  %313 = vmatpush.msra.mxu3 %v312_v41  ;;  %v358_v22 = vand.u32 4294901760, %v955_v53  ;;  %v369_v39 = vsub.f32 %v228_v0, %v271_v33  ;;  %v273_v40 = vand.u32 4294901760, %v227_v37 }
  0x18   :  { %189 = vmatpush.msra.mxu0 %v94_v24  ;;  %156 = vmatpush.msrb.mxu1 %v740_v5  ;;  %v335_v24 = vsub.f32 %v894_v29, %v334_v43  ;;  %v348_v57 = vand.u32 4294901760, %v347_v56 }
  0x19   :  { %256 = vmatpush.msra.mxu2 %v860_v58  ;;  %319 = vmatpush.msra.mxu3 %v318_v23  ;;  %v352_v54 = vand.u32 4294901760, %v946_v48  ;;  %v359_v63 = vsub.f32 %v955_v53, %v358_v22  ;;  %v370_v42 = vand.u32 4294901760, %v369_v39  ;;  %v375_v23 = vsub.f32 %v227_v37, %v273_v40 }
  0x1a   :  { %193 = vmatpush.msra.mxu0 %v100_v25  ;;  %158 = vmatpush.msrb.mxu1 %v748_v8  ;;  %v341_v25 = vsub.f32 %v912_v13, %v340_v47  ;;  %v336_v55 = vand.u32 4294901760, %v335_v24 }
  0x1b   :  { %162 = vmatmul.f32.vlgmr.msrb.gmra.mxu1 %v61_v30  ;;  %258 = vmatpush.msra.mxu2 %v871_v62  ;;  %v376_v24 = vand.u32 4294901760, %v375_v23 }
  0x1c   :  { %212 = vmatpush.msra.mxu1 %v736_v3  ;;  %325 = vmatpush.msra.mxu3 %v324_v16  ;;  %v342_v30 = vand.u32 4294901760, %v341_v25  ;;  %v353_v3 = vsub.f32 %v946_v48, %v352_v54  ;;  %v371_v16 = vsub.f32 %v369_v39, %v370_v42 }
  0x1d   :  { %387 = vmatpush.msrb.mxu0 %v790_v26  ;;  %260 = vmatpush.msra.mxu2 %v880_v2  ;;  %v377_v25 = vsub.f32 %v375_v23, %v376_v24 }
  0x1e   :  { %214 = vmatpush.msra.mxu1 %v738_v4  ;;  %331 = vmatpush.msra.mxu3 %v330_v17  ;;  %v354_v4 = vand.u32 4294901760, %v353_v3  ;;  %v372_v17 = vand.u32 4294901760, %v371_v16 }
  0x1f   :  { %195 = vmatmul.f32.vlgmr.msra.gmra.mxu0 %v764_v14  ;;  %262 = vmatpush.msra.mxu2 %v882_v6 }
  0x20   :  { %216 = vmatpush.msra.mxu1 %v740_v5  ;;  %390 = vmatpush.msrb.mxu0 %v793_v27  ;;  %v360_v5 = vand.u32 4294901760, %v359_v63 }
  0x21   :  { %337 = vmatpush.msra.mxu3 %v336_v55  ;;  %264 = vmatpush.msra.mxu2 %v896_v31  ;;  %v378_v55 = vand.u32 4294901760, %v377_v25 }
  0x22   :  { %218 = vmatpush.msra.mxu1 %v748_v8  ;;  %393 = vmatpush.msrb.mxu0 %v796_v28  ;;  %v229_v8 = vld [vmem:[%s1081_s3 + $0x10] sm:$0xff] }
  0x23   :  { %220 = vmatmul.f32.vlgmr.msra.gmra.mxu1 %v764_v14  ;;  %343 = vmatpush.msra.mxu3 %v342_v30  ;;  %v269_v14 = vand.u32 4294901760, %v229_v8 }
  0x24   :  { %440 = vmatpush.msrb.mxu1 %v775_v18  ;;  %396 = vmatpush.msrb.mxu0 %v863_v59 }
  0x25   :  { %349 = vmatpush.msra.mxu3 %v348_v57  ;;  %266 = vmatpush.msra.mxu2 %v933_v45  ;;  %v363_v32 = vsub.f32 %v229_v8, %v269_v14 }
  0x26   :  { %442 = vmatpush.msrb.mxu1 %v777_v19  ;;  %399 = vmatpush.msrb.mxu0 %v866_v60 }
  0x27   :  { %355 = vmatpush.msra.mxu3 %v354_v4  ;;  %268 = vmatpush.msra.mxu2 %v935_v15  ;;  %v364_v21 = vand.u32 4294901760, %v363_v32 }
  0x28   :  { %444 = vmatpush.msrb.mxu1 %v779_v20  ;;  %402 = vmatpush.msrb.mxu0 %v869_v61 }
  0x29   :  { %361 = vmatpush.msra.mxu3 %v360_v5  ;;  %270 = vmatpush.msra.mxu2 %v269_v14  ;;  %v365_v41 = vsub.f32 %v363_v32, %v364_v21 }
  0x2a   :  { %446 = vmatpush.msrb.mxu1 %v847_v50  ;;  %405 = vmatpush.msrb.mxu0 %v878_v1 }
  0x2b   :  { %272 = vmatpush.msra.mxu2 %v271_v33  ;;  %v366_v46 = vand.u32 4294901760, %v365_v41 }
  0x2c   :  { %448 = vmatpush.msrb.mxu1 %v849_v51  ;;  %408 = vmatpush.msrb.mxu0 %v889_v11 }
  0x2d   :  { %274 = vmatpush.msra.mxu2 %v273_v40  ;;  %367 = vmatpush.msra.mxu3 %v366_v46 }
  0x2e   :  { %450 = vmatpush.msrb.mxu1 %v851_v52  ;;  %411 = vmatpush.msrb.mxu0 %v894_v29 }
  0x2f   :  { %481 = vmatpush.msrb.mxu2 %v286_v34  ;;  %373 = vmatpush.msra.mxu3 %v372_v17 }
  0x30   :  { %452 = vmatpush.msrb.mxu1 %v860_v58  ;;  %414 = vmatpush.msrb.mxu0 %v912_v13 }
  0x31   :  { %485 = vmatpush.msrb.mxu2 %v292_v35  ;;  %379 = vmatpush.msra.mxu3 %v378_v55 }
  0x32   :  { %454 = vmatpush.msrb.mxu1 %v871_v62  ;;  %417 = vmatpush.msrb.mxu0 %v929_v44 }
  0x33   :  { %489 = vmatpush.msrb.mxu2 %v298_v36  ;;  %548 = vmatpush.msrb.mxu3 %v775_v18 }
  0x34   :  { %456 = vmatpush.msrb.mxu1 %v880_v2  ;;  %420 = vmatpush.msrb.mxu0 %v946_v48 }
  0x35   :  { %493 = vmatpush.msrb.mxu2 %v304_v7  ;;  %550 = vmatpush.msrb.mxu3 %v777_v19 }
  0x36   :  { %458 = vmatpush.msrb.mxu1 %v882_v6  ;;  %423 = vmatpush.msrb.mxu0 %v955_v53 }
  0x37   :  { %497 = vmatpush.msrb.mxu2 %v310_v9  ;;  %552 = vmatpush.msrb.mxu3 %v779_v20 }
  0x38   :  { %460 = vmatpush.msrb.mxu1 %v896_v31  ;;  %426 = vmatpush.msrb.mxu0 %v363_v32 }
  0x39   :  { %501 = vmatpush.msrb.mxu2 %v316_v10  ;;  %554 = vmatpush.msrb.mxu3 %v847_v50 }
  0x3a   :  { %462 = vmatpush.msrb.mxu1 %v933_v45  ;;  %429 = vmatpush.msrb.mxu0 %v369_v39 }
  0x3b   :  { %505 = vmatpush.msrb.mxu2 %v322_v12  ;;  %556 = vmatpush.msrb.mxu3 %v849_v51  ;;  %v224_v51 = vld [vmem:[%s1080_s2] sm:$0xff] }
  0x3c   :  { %464 = vmatpush.msrb.mxu1 %v935_v15  ;;  %432 = vmatpush.msrb.mxu0 %v375_v23 }
  0x3d   :  { %509 = vmatpush.msrb.mxu2 %v328_v38  ;;  %558 = vmatpush.msrb.mxu3 %v851_v52  ;;  %v690_v38 = vmov 8.0  }
  0x3e   :  { %466 = vmatpush.msrb.mxu1 %v269_v14  ;;  %659 = vrcp.f32 %v690_v38 }
  0x3f   :  { %513 = vmatpush.msrb.mxu2 %v334_v43  ;;  %560 = vmatpush.msrb.mxu3 %v860_v58 }
  0x40   :  { %468 = vmatpush.msrb.mxu1 %v271_v33 }
  0x41   :  { %517 = vmatpush.msrb.mxu2 %v340_v47  ;;  %562 = vmatpush.msrb.mxu3 %v871_v62 }
  0x42   :  { %470 = vmatpush.msrb.mxu1 %v273_v40 }
  0x43   :  { %521 = vmatpush.msrb.mxu2 %v346_v49  ;;  %564 = vmatpush.msrb.mxu3 %v880_v2  ;;  %v689_v2 = vmov 0.0  }
  0x44   :  { %29 = vst.msk [vmem:[#allocation2] sm:$0xff] %vm28_vm0, %v689_v2  ;;  %v660_v47 = vpop.eup %659 }
  0x45   :  { %525 = vmatpush.msrb.mxu2 %v352_v54  ;;  %566 = vmatpush.msrb.mxu3 %v882_v6  ;;  %v598_v48 = vmul.f32 8.0, %v660_v47  ;;  %vm602_vm1 = vweird.f32 %v660_v47 }
  0x47   :  { %529 = vmatpush.msrb.mxu2 %v358_v22  ;;  %568 = vmatpush.msrb.mxu3 %v896_v31  ;;  %v599_v49 = vsub.f32 1.0, %v598_v48 }
  0x49   :  { %533 = vmatpush.msrb.mxu2 %v364_v21  ;;  %570 = vmatpush.msrb.mxu3 %v933_v45  ;;  %v600_v22 = vmul.f32 %v660_v47, %v599_v49 }
  0x4b   :  { %537 = vmatpush.msrb.mxu2 %v370_v42  ;;  %572 = vmatpush.msrb.mxu3 %v935_v15  ;;  %v226_v44 = vld [vmem:[#allocation2] sm:$0xff]  ;;  %v601_v57 = vadd.f32 %v660_v47, %v600_v22 }
  0x4d   :  { %541 = vmatpush.msrb.mxu2 %v376_v24  ;;  %574 = vmatpush.msrb.mxu3 %v269_v14  ;;  %v603_v5 = vsel %vm602_vm1, %v660_v47, %v601_v57 }
  0x4f   :  { %576 = vmatpush.msrb.mxu3 %v271_v33 }
  0x51   :  { %578 = vmatpush.msrb.mxu3 %v273_v40 }
  0x8c   :  { %v65_v18 = vpop.f32.mrf.mxu0 }
  0x90   :  { %v106_v19 = vpop.f32.mrf.mxu1 }
  0x91   :  { %v107_v26 = vadd.f32 %v106_v19, %v65_v18  ;;  %v657_v19 = vld [vmem:[%s1082_s4] ss:$0 sm:$0xff] }
  0x94   :  { %v136_v20 = vpop.f32.mrf.mxu0 }
  0x95   :  { %v137_v28 = vadd.f32 %v136_v20, %v107_v26 }
  0x98   :  { %v163_v27 = vpop.f32.mrf.mxu1 }
  0x99   :  { %v164_v34 = vadd.f32 %v163_v27, %v137_v28  ;;  %v658_v27 = vld [vmem:[%s1083_s5] ss:$0 sm:$0xff] }
  0x9c   :  { %v196_v35 = vpop.f32.mrf.mxu0 }
  0x9d   :  { %v197_v36 = vadd.f32 %v196_v35, %v164_v34 }
  0xa0   :  { %v221_v50 = vpop.f32.mrf.mxu1 }
  0xa1   :  { %v222_v52 = vadd.f32 %v221_v50, %v197_v36 }
  0xa3   :  { %v225_v58 = vmul.f32 %v224_v51, %v222_v52 }
  0xa5   :  { %v275_v59 = vand.u32 4294901760, %v225_v58 }
  0xa7   :  { %v276_v60 = vsub.f32 %v225_v58, %v275_v59  ;;  %381 = vmatmul.f32.vlgmr.msra.gmra.mxu3 %v275_v59 }
  0xa9   :  { %435 = vmatmul.f32.vlgmr.msrb.gmra.mxu0 %v276_v60  ;;  %v277_v61 = vand.u32 4294901760, %v276_v60 }
  0xab   :  { %474 = vmatmul.f32.vlgmr.msrb.gmra.mxu1 %v277_v61  ;;  %v278_v62 = vsub.f32 %v276_v60, %v277_v61 }
  0xad   :  { %v279_v1 = vand.u32 4294901760, %v278_v62 }
  0xaf   :  { %280 = vmatmul.f32.vlgmr.msra.gmra.mxu2 %v279_v1  ;;  %580 = vmatmul.f32.vlgmr.msrb.gmra.mxu3 %v275_v59 }
  0xb7   :  { %543 = vmatmul.f32.vlgmr.msrb.gmra.mxu2 %v275_v59 }
 0x126   :  { %v436_v10 = vpop.f32.mrf.mxu0 }
 0x128   :  { %v475_v12 = vpop.f32.mrf.mxu1 }
 0x12a   :  { %v382_v6 = vpop.f32.mrf.mxu3 }
 0x132   :  { %v281_v7 = vpop.f32.mrf.mxu2  ;;  %v581_v43 = vpop.f32.mrf.mxu3 }
 0x133   :  { %v383_v9 = vadd.f32 %v382_v6, %v281_v7 }
 0x135   :  { %v437_v11 = vadd.f32 %v436_v10, %v383_v9 }
 0x137   :  { %v476_v29 = vadd.f32 %v475_v12, %v437_v11 }
 0x13a   :  { %v544_v31 = vpop.f32.mrf.mxu2 }
 0x13b   :  { %v545_v13 = vadd.f32 %v544_v31, %v476_v29 }
 0x13d   :  { %v582_v45 = vadd.f32 %v581_v43, %v545_v13 }
 0x13f   :  { %v584_v15 = vadd.f32 %v582_v45, %v226_v44 }
 0x141   :  { %585 = vst.msk [vmem:[#allocation2] sm:$0xff] %vm28_vm0, %v584_v15 }
 0x148   :  { %v589_v53 = vld [vmem:[#allocation2] sm:$0xff] }
 0x149   :  { %v590_v54 = vsel %vm28_vm0, %v589_v53, 0.0 }
 0x14a   :  { %v591_v56 = vrot.slane %v590_v54, 4 }
 0x14c   :  { %v592_v30 = vadd.f32 %v591_v56, %v590_v54 }
 0x14e   :  { %v593_v3 = vrot.slane %v592_v30, 2 }
 0x150   :  { %v594_v63 = vadd.f32 %v593_v3, %v592_v30 }
 0x152   :  { %v595_v4 = vrot.slane %v594_v63, 1 }
 0x154   :  { %v596_v8 = vadd.f32 %v595_v4, %v594_v63 }
 0x156   :  { %v604_v14 = vmul.f32 %v603_v5, %v596_v8 }
 0x158   :  { %v605_v0 = vsub.f32 %v589_v53, %v604_v14 }
 0x15a   :  { %v606_v32 = vmul.f32 %v605_v0, %v605_v0 }
 0x15c   :  { %v607_v33 = vsel %vm28_vm0, %v606_v32, 0.0 }
 0x15d   :  { %v608_v37 = vrot.slane %v607_v33, 4 }
 0x15f   :  { %v609_v21 = vadd.f32 %v608_v37, %v607_v33 }
 0x161   :  { %v610_v39 = vrot.slane %v609_v21, 2 }
 0x163   :  { %v611_v40 = vadd.f32 %v610_v39, %v609_v21 }
 0x165   :  { %v612_v41 = vrot.slane %v611_v40, 1 }
 0x167   :  { %v613_v42 = vadd.f32 %v612_v41, %v611_v40 }
 0x169   :  { %v614_v23 = vmul.f32 %v613_v42, %v603_v5 }
 0x16b   :  { %v615_v46 = vadd.f32 1e-05, %v614_v23 }
 0x16d   :  { %661 = vrsqrt.f32 %v615_v46  ;;  %vm622_vm3 = vweird.f32 %v615_v46 }
 0x173   :  { %v662_v16 = vpop.eup %661 }
 0x174   :  { %v617_v24 = vmul.f32 %v662_v16, %v615_v46  ;;  %vm623_vm2 = vweird.f32 %v662_v16 }
 0x175   :  { %vm624_vm4 = vmor %vm622_vm3, %vm623_vm2 }
 0x176   :  { %v618_v17 = vmul.f32 %v662_v16, %v617_v24 }
 0x178   :  { %v619_v25 = vmul.f32 0.5, %v618_v17 }
 0x17a   :  { %v620_v55 = vsub.f32 1.5, %v619_v25 }
 0x17c   :  { %v621_v18 = vmul.f32 %v662_v16, %v620_v55 }
 0x17e   :  { %v625_v20 = vsel %vm624_vm4, %v662_v16, %v621_v18 }
 0x17f   :  { %v626_v26 = vmul.f32 %v625_v20, %v605_v0 }
 0x181   :  { %v631_v28 = vmul.f32 %v657_v19, %v626_v26 }
 0x183   :  { %v636_v34 = vadd.f32 %v658_v27, %v631_v28 }
 0x185   :  { %637 = vst.msk [vmem:[#allocation3] sm:$0xff] %vm28_vm0, %v636_v34 }
 0x186   :  { %648 = dma.vmem_to_hbm [thread:$0]  %s644_s16, 128, %s646_s19, [#allocation4]  }
 0x187   :  { %687 = dma.done.wait [#allocation4], 128  }
 0x188   :  { %688 = vsyncadd [#allocation4], 4294967168 }
 0x189   :  { %653 = vsyncpa [#allocation4], 1 }

</bundles_post_ra>
